<compile_context>
chip_gen: v6e
topology: v6e:2x2x1
jax: 0.10.0
libtpu: 0.0.40
codegen_flags: <defaults>
</compile_context>

<pallas_src>
import numpy as np
import jax
import jax.numpy as jnp
from jax.experimental import pallas as pl
from jax.experimental.pallas import tpu as pltpu

# ---- MLPBase args ----
USE_FEATURE_NORMALIZATION = True
USE_ORTHOGONAL = True
USE_RELU = True
USE_CONV1D = True
STACKED_FRAMES = 1
LAYER_N = 1
HIDDEN_SIZE = 32
INPUTS_DIM = 16
BATCH = 4
EPS = 1e-5  # nn.LayerNorm default


def _round_up(x, m):
    return ((x + m - 1) // m) * m


# ---- derived static dims (conv geometry + lane padding) ----
C1, C2, C3 = HIDDEN_SIZE // 4, HIDDEN_SIZE // 2, HIDDEN_SIZE       # 8, 16, 32
L0 = INPUTS_DIM // STACKED_FRAMES                                  # 16
L1 = (L0 + 2 * 0 - 3) // 2 + 1                                     # 7  (k=3, s=2, p=0)
L2 = (L1 + 2 * 1 - 3) // 1 + 1                                     # 7  (k=3, s=1, p=1)
L3 = (L2 + 2 * 1 - 3) // 1 + 1                                     # 7  (k=3, s=1, p=1)
D1, D2, D3 = L1 * C1, L2 * C2, L3 * C3                             # 56, 112, 224

LANE = 128
P1, P2, P3 = _round_up(D1, LANE), _round_up(D2, LANE), _round_up(D3, LANE)  # 128, 128, 256
HOUT = _round_up(HIDDEN_SIZE, LANE)                                # 128 (lane-dense output)
VEC_W = max(P3, HOUT)                                              # 256
VEC_ROWS = _round_up(6 + LAYER_N, 8)                               # 8


# ----------------------------- Pallas kernel -----------------------------
def _dense(h, w_bf16, b):
    # single bf16 MXU pass, f32 accumulation; bias/activations stay f32
    return jnp.dot(h.astype(jnp.bfloat16), w_bf16,
                   preferred_element_type=jnp.float32) + b


def _ln_normalize(h, n):
    # single-pass stats over the lane axis; padded lanes are exactly zero so the sums
    # equal the real-lane sums, and the divisor is the *real* feature count n.
    s1 = jnp.sum(h, axis=-1, keepdims=True)
    s2 = jnp.sum(h * h, axis=-1, keepdims=True)
    mu = s1 * (1.0 / n)
    var = s2 * (1.0 / n) - mu * mu
    return (h - mu) * jax.lax.rsqrt(var + EPS)


def mlpbase_kernel(x_ref, vec_ref, w1_ref, w2_ref, w3_ref, wf1_ref, wh_ref, out_ref):
    x = x_ref[...]          # (TILE_B, INPUTS_DIM) f32
    vecs = vec_ref[...]     # (VEC_ROWS, VEC_W) f32: packed biases + final-LN affine

    b1 = vecs[0:1, :P1]
    b2 = vecs[1:2, :P2]
    b3 = vecs[2:3, :P3]
    bf1 = vecs[3:4, :HOUT]
    g_out = vecs[4:5, :HOUT]     # final LN gamma (zeros in padded lanes)
    be_out = vecs[5:6, :HOUT]    # final LN beta  (zeros in padded lanes)

    # feature_norm = nn.LayerNorm(inputs_dim); affine folded into w1/b1 offline.
    # Two-pass variance for robustness on raw observations.
    mu0 = jnp.mean(x, axis=-1, keepdims=True)
    xc = x - mu0
    var0 = jnp.mean(xc * xc, axis=-1, keepdims=True)
    h = xc * jax.lax.rsqrt(var0 + EPS)

    # CONVLayer: Conv1d(s=2,p=0) -> ReLU -> Conv1d(s=1,p=1) -> ReLU -> Conv1d(s=1,p=1) -> ReLU
    # (each Conv1d is a zero-padded banded dense matmul; padded lanes stay exactly 0)
    h = jnp.maximum(_dense(h, w1_ref[...], b1), 0.0)
    h = jnp.maximum(_dense(h, w2_ref[...], b2), 0.0)
    h = jnp.maximum(_dense(h, w3_ref[...], b3), 0.0)

    # MLPLayer.fc1: Linear -> ReLU -> LayerNorm (affine folded into the next Linear)
    h = _ln_normalize(jnp.maximum(_dense(h, wf1_ref[...], bf1), 0.0), HIDDEN_SIZE)
    if LAYER_N == 0:
        h = h * g_out + be_out

    # MLPLayer.fc2[i]: Linear -> ReLU -> LayerNorm, layer_N times
    for i in range(LAYER_N):
        bh = vecs[6 + i:7 + i, :HOUT]
        h = _ln_normalize(jnp.maximum(_dense(h, wh_ref[i], bh), 0.0), HIDDEN_SIZE)
        if i == LAYER_N - 1:
            # final LN affine kept in-kernel; padded-lane gamma/beta are 0 -> lanes 32..127
            # of the output are exactly 0 (output stays lane-dense AND clean).
            h = h * g_out + be_out

    out_ref[...] = h


def _default_tile_b(B):
    Br = _round_up(B, 8)
    if Br <= 8:
        return Br
    # >= 2 grid steps so the "parallel" batch axis shards across both v7x TensorCores;
    # tile capped at 512 rows (per-step overhead amortized, VMEM never the constraint).
    n_steps = max(2, -(-Br // 512))
    return _round_up(-(-Br // n_steps), 8)


def mlp_base_forward(x, kp, *, tile_b=None):
    B = x.shape[0]
    if tile_b is None:
        tile_b = _default_tile_b(B)
    Bp = _round_up(B, tile_b)
    xp = jnp.pad(x, ((0, Bp - B), (0, 0))) if Bp != B else x

    vecs, w1, w2, w3, wf1, wh = (kp["vecs"], kp["w1"], kp["w2"], kp["w3"],
                                 kp["wf1"], kp["wh"])

    grid = (Bp // tile_b,)

    def full(a):  # whole-array block, constant index -> stays VMEM-resident
        return pl.BlockSpec(a.shape, lambda i, nd=a.ndim: (0,) * nd)

    in_specs = [pl.BlockSpec((tile_b, INPUTS_DIM), lambda i: (i, 0)),
                full(vecs), full(w1), full(w2), full(w3), full(wf1), full(wh)]
    out_specs = pl.BlockSpec((tile_b, HOUT), lambda i: (i, 0))

    weight_bytes = sum(a.size * a.dtype.itemsize for a in (vecs, w1, w2, w3, wf1, wh))
    flops = 2 * Bp * (INPUTS_DIM * P1 + P1 * P2 + P2 * P3 + P3 * HOUT
                      + LAYER_N * HOUT * HOUT)
    cost = pl.CostEstimate(
        flops=int(flops),
        transcendentals=int(Bp * (2 + LAYER_N)),
        bytes_accessed=int(4 * Bp * (INPUTS_DIM + HOUT) + weight_bytes))

    out = pl.pallas_call(
        mlpbase_kernel,
        out_shape=jax.ShapeDtypeStruct((Bp, HOUT), jnp.float32),
        grid=grid,
        in_specs=in_specs,
        out_specs=out_specs,
        compiler_params=pltpu.CompilerParams(dimension_semantics=("parallel",)),
        cost_estimate=cost,
    )(xp, vecs, w1, w2, w3, wf1, wh)
    return out[:B, :HIDDEN_SIZE]


# ------------------------ parameter setup (glue) -------------------------
def conv1d_as_dense(w, b, L_in, stride, pad):
    """Torch Conv1d weight (C_out, C_in, K) -> dense banded matrix acting on a
    position-major / channels-last flattening (in index = l_in*C_in + c_in,
    out index = l_out*C_out + c_out)."""
    w = np.asarray(w)
    b = np.asarray(b)
    C_out, C_in, K = w.shape
    L_out = (L_in + 2 * pad - K) // stride + 1
    big = np.zeros((L_in * C_in, L_out * C_out), np.float32)
    for lo in range(L_out):
        for k in range(K):
            li = lo * stride + k - pad
            if 0 <= li < L_in:
                big[li * C_in:(li + 1) * C_in, lo * C_out:(lo + 1) * C_out] = w[:, :, k].T
    b_big = np.tile(b, L_out).astype(np.float32)
    return big, b_big, L_out


def _embed(a, rows, cols):
    out = np.zeros((rows, cols), np.float32)
    out[:a.shape[0], :a.shape[1]] = a
    return out


def _fold_ln_affine(gamma, beta, w, b):
    """Fold LN affine (y = n*gamma + beta) into the following dense (z = y@w + b):
    z = n @ (gamma[:,None]*w) + (beta@w + b)."""
    return gamma[:, None] * w, beta @ w + b


def make_params(key):
    gain = float(np.sqrt(2.0))  # nn.init.calculate_gain('relu')
    ortho = jax.nn.initializers.orthogonal(scale=gain)
    ks = jax.random.split(key, 5 + LAYER_N)

    # torch-layout conv weights (C_out, C_in, K); biases init to 0
    w1 = ortho(ks[0], (C1, STACKED_FRAMES * 3), jnp.float32).reshape(C1, STACKED_FRAMES, 3)
    w2 = ortho(ks[1], (C2, C1 * 3), jnp.float32).reshape(C2, C1, 3)
    w3 = ortho(ks[2], (C3, C2 * 3), jnp.float32).reshape(C3, C2, 3)
    b1 = jnp.zeros((C1,), jnp.float32)
    b2 = jnp.zeros((C2,), jnp.float32)
    b3 = jnp.zeros((C3,), jnp.float32)

    w1_big, b1_big, l1 = conv1d_as_dense(w1, b1, L0, stride=2, pad=0)
    w2_big, b2_big, l2 = conv1d_as_dense(w2, b2, l1, stride=1, pad=1)
    w3_big, b3_big, l3 = conv1d_as_dense(w3, b3, l2, stride=1, pad=1)
    assert (l1, l2, l3) == (L1, L2, L3)
    mlp_in = C3 * l3

    # torch-layout Linear weights (out, in); biases 0
    wf1 = ortho(ks[3], (HIDDEN_SIZE, mlp_in), jnp.float32)
    wh = jnp.stack([ortho(ks[4 + i], (HIDDEN_SIZE, HIDDEN_SIZE), jnp.float32)
                    for i in range(LAYER_N)])
    bf1 = np.zeros((HIDDEN_SIZE,), np.float32)
    bh = np.zeros((LAYER_N, HIDDEN_SIZE), np.float32)

    # LN affines (torch default init: gamma=1, beta=0)
    ln0_g = np.ones((INPUTS_DIM,), np.float32)
    ln0_b = np.zeros((INPUTS_DIM,), np.float32)
    ln_g = [np.ones((HIDDEN_SIZE,), np.float32) for _ in range(LAYER_N + 1)]   # fc1 + fc2[i]
    ln_b = [np.zeros((HIDDEN_SIZE,), np.float32) for _ in range(LAYER_N + 1)]

    # fold feature_norm affine into the first banded conv matmul
    w1_big, b1_big = _fold_ln_affine(ln0_g, ln0_b, w1_big, b1_big)

    # kernel-layout fc1: transpose + row-permutation (torch channel-major flatten c*L3+l
    # -> kernel position-major flatten l*C3+c)
    perm = np.array([c * L3 + l for l in range(L3) for c in range(C3)])
    wf1_k = np.asarray(wf1).T[perm]          # (D3, HIDDEN_SIZE)

    # kernel-layout fc2 weights with the preceding LN affine folded in
    wh_k = []
    bh_k = []
    for i in range(LAYER_N):
        w_i = np.asarray(wh[i]).T            # (HIDDEN_SIZE, HIDDEN_SIZE)
        w_i, b_i = _fold_ln_affine(ln_g[i], ln_b[i], w_i, bh[i])
        wh_k.append(w_i)
        bh_k.append(b_i)
    # final LN affine (applied in-kernel; padded lanes zero)
    g_out, be_out = ln_g[LAYER_N], ln_b[LAYER_N]

    # lane-pad all matrices (zero weights in padded rows/cols -> padded lanes stay 0)
    w1_p = _embed(w1_big, INPUTS_DIM, P1)
    w2_p = _embed(w2_big, P1, P2)
    w3_p = _embed(w3_big, P2, P3)
    wf1_p = _embed(wf1_k, P3, HOUT)
    wh_p = np.stack([_embed(w, HOUT, HOUT) for w in wh_k]) if LAYER_N > 0 \
        else np.zeros((1, HOUT, HOUT), np.float32)

    # pack biases + final-LN affine into one f32 slab
    vecs = np.zeros((VEC_ROWS, VEC_W), np.float32)
    vecs[0, :D1] = b1_big
    vecs[1, :D2] = b2_big
    vecs[2, :D3] = b3_big
    vecs[3, :HIDDEN_SIZE] = bf1
    vecs[4, :HIDDEN_SIZE] = g_out
    vecs[5, :HIDDEN_SIZE] = be_out
    for i in range(LAYER_N):
        vecs[6 + i, :HIDDEN_SIZE] = bh_k[i]

    kernel_params = dict(
        vecs=jnp.asarray(vecs),
        w1=jnp.asarray(w1_p, dtype=jnp.bfloat16),
        w2=jnp.asarray(w2_p, dtype=jnp.bfloat16),
        w3=jnp.asarray(w3_p, dtype=jnp.bfloat16),
        wf1=jnp.asarray(wf1_p, dtype=jnp.bfloat16),
        wh=jnp.asarray(wh_p, dtype=jnp.bfloat16),
    )
    torch_params = dict(w1=w1, b1=b1, w2=w2, b2=b2, w3=w3, b3=b3, wf1=wf1, wh=wh)
    return kernel_params, torch_params


# ---------------------- pure-JAX reference (check) -----------------------
def reference_forward(x, tp):
    def ln(h):
        mu = h.mean(-1, keepdims=True)
        var = ((h - mu) ** 2).mean(-1, keepdims=True)
        return (h - mu) / jnp.sqrt(var + EPS)

    prec = jax.lax.Precision.HIGHEST
    dn = ("NCH", "OIH", "NCH")
    h = ln(x)  # feature_norm (gamma=1, beta=0)
    B = h.shape[0]
    h = h.reshape(B, STACKED_FRAMES, -1)  # torch NCL view
    h = jax.lax.conv_general_dilated(h, tp["w1"], (2,), [(0, 0)],
                                     dimension_numbers=dn, precision=prec) + tp["b1"][None, :, None]
    h = jax.nn.relu(h)
    h = jax.lax.conv_general_dilated(h, tp["w2"], (1,), [(1, 1)],
                                     dimension_numbers=dn, precision=prec) + tp["b2"][None, :, None]
    h = jax.nn.relu(h)
    h = jax.lax.conv_general_dilated(h, tp["w3"], (1,), [(1, 1)],
                                     dimension_numbers=dn, precision=prec) + tp["b3"][None, :, None]
    h = jax.nn.relu(h)
    h = h.reshape(B, -1)  # torch flatten (channel-major)
    h = ln(jax.nn.relu(jnp.dot(h, tp["wf1"].T, precision=prec)))
    for i in range(LAYER_N):
        h = ln(jax.nn.relu(jnp.dot(h, tp["wh"][i].T, precision=prec)))
    return h


if __name__ == "__main__":
    key = jax.random.PRNGKey(0)
    pkey, xkey = jax.random.split(key)
    kparams, tparams = make_params(pkey)
    x = jax.random.normal(xkey, (BATCH, INPUTS_DIM), jnp.float32)

    out = jax.block_until_ready(mlp_base_forward(x, kparams))
    assert out.shape == (BATCH, HIDDEN_SIZE)

    ref = reference_forward(x, tparams)
    # tolerance reflects single-pass bf16 MXU operands vs an f32 HIGHEST reference;
    # structural errors (wrong band / permutation / fold) would be O(1).
    np.testing.assert_allclose(np.asarray(out), np.asarray(ref), rtol=2e-2, atol=3e-2)
    print("KERNEL_OK")
</pallas_src>

<mosaic_0001>
module attributes {stable_mosaic.version = 11 : i64} {
  func.func @mlpbase_kernel(%arg0: i32, %arg1: memref<8x16xf32, #tpu.memory_space<vmem>>, %arg2: memref<8x256xf32, #tpu.memory_space<vmem>>, %arg3: memref<16x128xbf16, #tpu.memory_space<vmem>>, %arg4: memref<128x128xbf16, #tpu.memory_space<vmem>>, %arg5: memref<128x256xbf16, #tpu.memory_space<vmem>>, %arg6: memref<256x128xbf16, #tpu.memory_space<vmem>>, %arg7: memref<1x128x128xbf16, #tpu.memory_space<vmem>>, %arg8: memref<8x128xf32, #tpu.memory_space<vmem>>) attributes {dimension_semantics = [#tpu.dimension_semantics<parallel>], iteration_bounds = array<i64: 1>, scalar_prefetch = 0 : i64, scratch_operands = 0 : i64, tpu.core_type = #tpu.core_type<tc>, window_params = [{transform_indices = @transform_0, window_bounds = array<i64: 8, 16>}, {pipeline_mode = #tpu.pipeline_mode<synchronous>, transform_indices = @transform_1, window_bounds = array<i64: 8, 256>}, {pipeline_mode = #tpu.pipeline_mode<synchronous>, transform_indices = @transform_2, window_bounds = array<i64: 16, 128>}, {pipeline_mode = #tpu.pipeline_mode<synchronous>, transform_indices = @transform_3, window_bounds = array<i64: 128, 128>}, {pipeline_mode = #tpu.pipeline_mode<synchronous>, transform_indices = @transform_4, window_bounds = array<i64: 128, 256>}, {pipeline_mode = #tpu.pipeline_mode<synchronous>, transform_indices = @transform_5, window_bounds = array<i64: 256, 128>}, {pipeline_mode = #tpu.pipeline_mode<synchronous>, transform_indices = @transform_6, window_bounds = array<i64: 1, 128, 128>}, {transform_indices = @transform_7, window_bounds = array<i64: 8, 128>}]} {
    %c0 = arith.constant 0 : index
    %c0_0 = arith.constant 0 : index
    %0 = vector.load %arg1[%c0, %c0_0] : memref<8x16xf32, #tpu.memory_space<vmem>>, vector<8x16xf32>
    %c0_1 = arith.constant 0 : index
    %c0_2 = arith.constant 0 : index
    %1 = vector.load %arg2[%c0_1, %c0_2] : memref<8x256xf32, #tpu.memory_space<vmem>>, vector<8x256xf32>
    %2 = vector.extract_strided_slice %1 {offsets = [0, 0], sizes = [1, 128], strides = [1, 1]} : vector<8x256xf32> to vector<1x128xf32>
    %3 = vector.extract_strided_slice %1 {offsets = [1, 0], sizes = [1, 128], strides = [1, 1]} : vector<8x256xf32> to vector<1x128xf32>
    %4 = vector.extract_strided_slice %1 {offsets = [2, 0], sizes = [1, 256], strides = [1, 1]} : vector<8x256xf32> to vector<1x256xf32>
    %5 = vector.extract_strided_slice %1 {offsets = [3, 0], sizes = [1, 128], strides = [1, 1]} : vector<8x256xf32> to vector<1x128xf32>
    %6 = vector.extract_strided_slice %1 {offsets = [4, 0], sizes = [1, 128], strides = [1, 1]} : vector<8x256xf32> to vector<1x128xf32>
    %7 = vector.extract_strided_slice %1 {offsets = [5, 0], sizes = [1, 128], strides = [1, 1]} : vector<8x256xf32> to vector<1x128xf32>
    %cst = arith.constant dense<0.000000e+00> : vector<8xf32>
    %8 = vector.multi_reduction <add>, %0, %cst [1] : vector<8x16xf32> to vector<8xf32>
    %9 = vector.shape_cast %8 : vector<8xf32> to vector<8x1xf32>
    %cst_3 = arith.constant 1.600000e+01 : f32
    %10 = vector.broadcast %cst_3 : f32 to vector<8x1xf32>
    %11 = arith.divf %9, %10 : vector<8x1xf32>
    %12 = vector.broadcast %11 : vector<8x1xf32> to vector<8x16xf32>
    %13 = arith.subf %0, %12 : vector<8x16xf32>
    %14 = arith.mulf %13, %13 : vector<8x16xf32>
    %cst_4 = arith.constant dense<0.000000e+00> : vector<8xf32>
    %15 = vector.multi_reduction <add>, %14, %cst_4 [1] : vector<8x16xf32> to vector<8xf32>
    %16 = vector.shape_cast %15 : vector<8xf32> to vector<8x1xf32>
    %cst_5 = arith.constant 1.600000e+01 : f32
    %17 = vector.broadcast %cst_5 : f32 to vector<8x1xf32>
    %18 = arith.divf %16, %17 : vector<8x1xf32>
    %cst_6 = arith.constant 9.99999974E-6 : f32
    %19 = vector.broadcast %cst_6 : f32 to vector<8x1xf32>
    %20 = arith.addf %18, %19 : vector<8x1xf32>
    %21 = math.rsqrt %20 : vector<8x1xf32>
    %22 = vector.broadcast %21 : vector<8x1xf32> to vector<8x16xf32>
    %23 = arith.mulf %13, %22 : vector<8x16xf32>
    %c0_7 = arith.constant 0 : index
    %c0_8 = arith.constant 0 : index
    %24 = vector.load %arg3[%c0_7, %c0_8] : memref<16x128xbf16, #tpu.memory_space<vmem>>, vector<16x128xbf16>
    %25 = arith.truncf %23 : vector<8x16xf32> to vector<8x16xbf16>
    %cst_9 = arith.constant dense<0.000000e+00> : vector<8x128xf32>
    %26 = tpu.matmul %25, %24, %cst_9 {dimension_numbers = #tpu.dot_dimension_numbers<[1], [0], [0], [1], [0, 0, 1, 1], [], []>} : vector<8x16xbf16>, vector<16x128xbf16>, vector<8x128xf32> -> vector<8x128xf32>
    %27 = vector.broadcast %2 : vector<1x128xf32> to vector<8x128xf32>
    %28 = arith.addf %26, %27 : vector<8x128xf32>
    %cst_10 = arith.constant 0.000000e+00 : f32
    %29 = vector.broadcast %cst_10 : f32 to vector<8x128xf32>
    %30 = arith.maximumf %28, %29 : vector<8x128xf32>
    %c0_11 = arith.constant 0 : index
    %c0_12 = arith.constant 0 : index
    %31 = vector.load %arg4[%c0_11, %c0_12] : memref<128x128xbf16, #tpu.memory_space<vmem>>, vector<128x128xbf16>
    %32 = arith.truncf %30 : vector<8x128xf32> to vector<8x128xbf16>
    %cst_13 = arith.constant dense<0.000000e+00> : vector<8x128xf32>
    %33 = tpu.matmul %32, %31, %cst_13 {dimension_numbers = #tpu.dot_dimension_numbers<[1], [0], [0], [1], [0, 0, 1, 1], [], []>} : vector<8x128xbf16>, vector<128x128xbf16>, vector<8x128xf32> -> vector<8x128xf32>
    %34 = vector.broadcast %3 : vector<1x128xf32> to vector<8x128xf32>
    %35 = arith.addf %33, %34 : vector<8x128xf32>
    %cst_14 = arith.constant 0.000000e+00 : f32
    %36 = vector.broadcast %cst_14 : f32 to vector<8x128xf32>
    %37 = arith.maximumf %35, %36 : vector<8x128xf32>
    %c0_15 = arith.constant 0 : index
    %c0_16 = arith.constant 0 : index
    %38 = vector.load %arg5[%c0_15, %c0_16] : memref<128x256xbf16, #tpu.memory_space<vmem>>, vector<128x256xbf16>
    %39 = arith.truncf %37 : vector<8x128xf32> to vector<8x128xbf16>
    %cst_17 = arith.constant dense<0.000000e+00> : vector<8x256xf32>
    %40 = tpu.matmul %39, %38, %cst_17 {dimension_numbers = #tpu.dot_dimension_numbers<[1], [0], [0], [1], [0, 0, 1, 1], [], []>} : vector<8x128xbf16>, vector<128x256xbf16>, vector<8x256xf32> -> vector<8x256xf32>
    %41 = vector.broadcast %4 : vector<1x256xf32> to vector<8x256xf32>
    %42 = arith.addf %40, %41 : vector<8x256xf32>
    %cst_18 = arith.constant 0.000000e+00 : f32
    %43 = vector.broadcast %cst_18 : f32 to vector<8x256xf32>
    %44 = arith.maximumf %42, %43 : vector<8x256xf32>
    %c0_19 = arith.constant 0 : index
    %c0_20 = arith.constant 0 : index
    %45 = vector.load %arg6[%c0_19, %c0_20] : memref<256x128xbf16, #tpu.memory_space<vmem>>, vector<256x128xbf16>
    %46 = arith.truncf %44 : vector<8x256xf32> to vector<8x256xbf16>
    %cst_21 = arith.constant dense<0.000000e+00> : vector<8x128xf32>
    %47 = tpu.matmul %46, %45, %cst_21 {dimension_numbers = #tpu.dot_dimension_numbers<[1], [0], [0], [1], [0, 0, 1, 1], [], []>} : vector<8x256xbf16>, vector<256x128xbf16>, vector<8x128xf32> -> vector<8x128xf32>
    %48 = vector.broadcast %5 : vector<1x128xf32> to vector<8x128xf32>
    %49 = arith.addf %47, %48 : vector<8x128xf32>
    %cst_22 = arith.constant 0.000000e+00 : f32
    %50 = vector.broadcast %cst_22 : f32 to vector<8x128xf32>
    %51 = arith.maximumf %49, %50 : vector<8x128xf32>
    %cst_23 = arith.constant dense<0.000000e+00> : vector<8xf32>
    %52 = vector.multi_reduction <add>, %51, %cst_23 [1] : vector<8x128xf32> to vector<8xf32>
    %53 = vector.shape_cast %52 : vector<8xf32> to vector<8x1xf32>
    %54 = arith.mulf %51, %51 : vector<8x128xf32>
    %cst_24 = arith.constant dense<0.000000e+00> : vector<8xf32>
    %55 = vector.multi_reduction <add>, %54, %cst_24 [1] : vector<8x128xf32> to vector<8xf32>
    %56 = vector.shape_cast %55 : vector<8xf32> to vector<8x1xf32>
    %cst_25 = arith.constant 3.125000e-02 : f32
    %57 = vector.broadcast %cst_25 : f32 to vector<8x1xf32>
    %58 = arith.mulf %53, %57 : vector<8x1xf32>
    %cst_26 = arith.constant 3.125000e-02 : f32
    %59 = vector.broadcast %cst_26 : f32 to vector<8x1xf32>
    %60 = arith.mulf %56, %59 : vector<8x1xf32>
    %61 = arith.mulf %58, %58 : vector<8x1xf32>
    %62 = arith.subf %60, %61 : vector<8x1xf32>
    %63 = vector.broadcast %58 : vector<8x1xf32> to vector<8x128xf32>
    %64 = arith.subf %51, %63 : vector<8x128xf32>
    %cst_27 = arith.constant 9.99999974E-6 : f32
    %65 = vector.broadcast %cst_27 : f32 to vector<8x1xf32>
    %66 = arith.addf %62, %65 : vector<8x1xf32>
    %67 = math.rsqrt %66 : vector<8x1xf32>
    %68 = vector.broadcast %67 : vector<8x1xf32> to vector<8x128xf32>
    %69 = arith.mulf %64, %68 : vector<8x128xf32>
    %70 = vector.extract_strided_slice %1 {offsets = [6, 0], sizes = [1, 128], strides = [1, 1]} : vector<8x256xf32> to vector<1x128xf32>
    %c0_28 = arith.constant 0 : index
    %c0_29 = arith.constant 0 : index
    %c0_30 = arith.constant 0 : index
    %71 = vector.load %arg7[%c0_28, %c0_29, %c0_30] : memref<1x128x128xbf16, #tpu.memory_space<vmem>>, vector<1x128x128xbf16>
    %72 = vector.shape_cast %71 : vector<1x128x128xbf16> to vector<128x128xbf16>
    %73 = arith.truncf %69 : vector<8x128xf32> to vector<8x128xbf16>
    %cst_31 = arith.constant dense<0.000000e+00> : vector<8x128xf32>
    %74 = tpu.matmul %73, %72, %cst_31 {dimension_numbers = #tpu.dot_dimension_numbers<[1], [0], [0], [1], [0, 0, 1, 1], [], []>} : vector<8x128xbf16>, vector<128x128xbf16>, vector<8x128xf32> -> vector<8x128xf32>
    %75 = vector.broadcast %70 : vector<1x128xf32> to vector<8x128xf32>
    %76 = arith.addf %74, %75 : vector<8x128xf32>
    %cst_32 = arith.constant 0.000000e+00 : f32
    %77 = vector.broadcast %cst_32 : f32 to vector<8x128xf32>
    %78 = arith.maximumf %76, %77 : vector<8x128xf32>
    %cst_33 = arith.constant dense<0.000000e+00> : vector<8xf32>
    %79 = vector.multi_reduction <add>, %78, %cst_33 [1] : vector<8x128xf32> to vector<8xf32>
    %80 = vector.shape_cast %79 : vector<8xf32> to vector<8x1xf32>
    %81 = arith.mulf %78, %78 : vector<8x128xf32>
    %cst_34 = arith.constant dense<0.000000e+00> : vector<8xf32>
    %82 = vector.multi_reduction <add>, %81, %cst_34 [1] : vector<8x128xf32> to vector<8xf32>
    %83 = vector.shape_cast %82 : vector<8xf32> to vector<8x1xf32>
    %cst_35 = arith.constant 3.125000e-02 : f32
    %84 = vector.broadcast %cst_35 : f32 to vector<8x1xf32>
    %85 = arith.mulf %80, %84 : vector<8x1xf32>
    %cst_36 = arith.constant 3.125000e-02 : f32
    %86 = vector.broadcast %cst_36 : f32 to vector<8x1xf32>
    %87 = arith.mulf %83, %86 : vector<8x1xf32>
    %88 = arith.mulf %85, %85 : vector<8x1xf32>
    %89 = arith.subf %87, %88 : vector<8x1xf32>
    %90 = vector.broadcast %85 : vector<8x1xf32> to vector<8x128xf32>
    %91 = arith.subf %78, %90 : vector<8x128xf32>
    %cst_37 = arith.constant 9.99999974E-6 : f32
    %92 = vector.broadcast %cst_37 : f32 to vector<8x1xf32>
    %93 = arith.addf %89, %92 : vector<8x1xf32>
    %94 = math.rsqrt %93 : vector<8x1xf32>
    %95 = vector.broadcast %94 : vector<8x1xf32> to vector<8x128xf32>
    %96 = arith.mulf %91, %95 : vector<8x128xf32>
    %97 = vector.broadcast %6 : vector<1x128xf32> to vector<8x128xf32>
    %98 = arith.mulf %96, %97 : vector<8x128xf32>
    %99 = vector.broadcast %7 : vector<1x128xf32> to vector<8x128xf32>
    %100 = arith.addf %98, %99 : vector<8x128xf32>
    %c0_38 = arith.constant 0 : index
    %c0_39 = arith.constant 0 : index
    %101 = vector.load %arg8[%c0_38, %c0_39] : memref<8x128xf32, #tpu.memory_space<vmem>>, vector<8x128xf32>
    tpu.vector_store %arg8[%c0_38, %c0_39], %100 {strides = array<i32>} : memref<8x128xf32, #tpu.memory_space<vmem>>, vector<8x128xf32>,
    return
  }
  func.func @transform_0(%arg0: i32) -> (i32, i32) {
    %c0_i32 = arith.constant 0 : i32
    %c0_i32_0 = arith.constant 0 : i32
    return %arg0, %c0_i32 : i32, i32
  }
  func.func @transform_1(%arg0: i32) -> (i32, i32) {
    %c0_i32 = arith.constant 0 : i32
    %c0_i32_0 = arith.constant 0 : i32
    %c0_i32_1 = arith.constant 0 : i32
    return %c0_i32, %c0_i32_0 : i32, i32
  }
  func.func @transform_2(%arg0: i32) -> (i32, i32) {
    %c0_i32 = arith.constant 0 : i32
    %c0_i32_0 = arith.constant 0 : i32
    %c0_i32_1 = arith.constant 0 : i32
    return %c0_i32, %c0_i32_0 : i32, i32
  }
  func.func @transform_3(%arg0: i32) -> (i32, i32) {
    %c0_i32 = arith.constant 0 : i32
    %c0_i32_0 = arith.constant 0 : i32
    %c0_i32_1 = arith.constant 0 : i32
    return %c0_i32, %c0_i32_0 : i32, i32
  }
  func.func @transform_4(%arg0: i32) -> (i32, i32) {
    %c0_i32 = arith.constant 0 : i32
    %c0_i32_0 = arith.constant 0 : i32
    %c0_i32_1 = arith.constant 0 : i32
    return %c0_i32, %c0_i32_0 : i32, i32
  }
  func.func @transform_5(%arg0: i32) -> (i32, i32) {
    %c0_i32 = arith.constant 0 : i32
    %c0_i32_0 = arith.constant 0 : i32
    %c0_i32_1 = arith.constant 0 : i32
    return %c0_i32, %c0_i32_0 : i32, i32
  }
  func.func @transform_6(%arg0: i32) -> (i32, i32, i32) {
    %c0_i32 = arith.constant 0 : i32
    %c0_i32_0 = arith.constant 0 : i32
    %c0_i32_1 = arith.constant 0 : i32
    %c0_i32_2 = arith.constant 0 : i32
    return %c0_i32, %c0_i32_0, %c0_i32_1 : i32, i32, i32
  }
  func.func @transform_7(%arg0: i32) -> (i32, i32) {
    %c0_i32 = arith.constant 0 : i32
    %c0_i32_0 = arith.constant 0 : i32
    return %arg0, %c0_i32 : i32, i32
  }
}

</mosaic_0001>

<bundles_post_ra>
// kernel: tpu_custom_call.1
= control target key start
LH: loop header
LB: loop body
LE: loop exit
PB: predicated region body
PF: predicated region fallthrough
CT: control target
= control target key end

     0   :  { %12 = vsyncpa [#allocation3], 0  ;;  %s1313_s0 = inlined_call_operand.hbm [shape: f32[8,16], index: 0, kind: input, shape index: {}]   ;;  %s1314_s1 = inlined_call_operand.hbm [shape: f32[8,256], index: 1, kind: input, shape index: {}]   ;;  %s1315_s2 = inlined_call_operand.hbm [shape: bf16[16,128], index: 2, kind: input, shape index: {}]   ;;  %s1316_s3 = inlined_call_operand.hbm [shape: bf16[128,128], index: 3, kind: input, shape index: {}]   ;;  %s1317_s4 = inlined_call_operand.hbm [shape: bf16[128,256], index: 4, kind: input, shape index: {}]   ;;  %s1318_s5 = inlined_call_operand.hbm [shape: bf16[256,128], index: 5, kind: input, shape index: {}]   ;;  %s1319_s6 = inlined_call_operand.hbm [shape: bf16[1,128,128], index: 6, kind: input, shape index: {}]   ;;  %s1320_s7 = inlined_call_operand.hbm [shape: f32[8,128], index: 7, kind: output, shape index: {}]  }
   0x1   :  { %13 = vsyncpa [#allocation6], 0 }
   0x2   :  { %14 = vsyncpa [#allocation9], 0 }
   0x3   :  { %15 = vsyncpa [#allocation12], 0 }
   0x4   :  { %16 = vsyncpa [#allocation4], 0  ;;  %s1178_s24 = smov [#allocation5]  }
   0x5   :  { %s33_s25 = sshll.u32 %s1178_s24, 4  ;;  %s34_s25 = int_to_ptr.vmem [resolvable:$true] %s33_s25 }
   0x6   :  { %s1016_s26 = scalar_lea.vmem %s34_s25, 256  ;;  %p1021_p1 = scmp.lt.s32.totalorder %s34_s25, %s34_s25 }
   0x7   :  { %p1017_p0 = scmp.ne.s32.totalorder %s34_s25, %s1016_s26  ;;  %p1022_p2 = scmp.lt.s32.totalorder %s1016_s26, %s1016_s26 }
   0x9   :  { %p1023_p3 = por %p1022_p2, %p1021_p1 }
   0xb   :  { %p1024_p4 = pnand %p1023_p3, %p1017_p0 }
   0xd   :  { %1027 = shalt.err (!%p1024_p4)
}
   0xe   :  { %36 = dma.hbm_to_vmem [thread:$0]  %s1314_s1, 256, %s34_s25, [#allocation6]  }
   0xf   :  { %s1179_s29 = smov [#allocation8]   ;;  %s1180_s8 = smov [#allocation11]  }
  0x10   :  { %s54_s30 = sshll.u32 %s1179_s29, 4  ;;  %s78_s9 = sshll.u32 %s1180_s8, 4  ;;  %s55_s30 = int_to_ptr.vmem [resolvable:$true] %s54_s30  ;;  %s79_s9 = int_to_ptr.vmem [resolvable:$true] %s78_s9 }
  0x11   :  { %s1036_s10 = scalar_lea.vmem %s55_s30, 1024  ;;  %p1041_p6 = scmp.lt.s32.totalorder %s55_s30, %s55_s30 }
  0x12   :  { %p1037_p5 = scmp.ne.s32.totalorder %s55_s30, %s1036_s10  ;;  %p1042_p7 = scmp.lt.s32.totalorder %s1036_s10, %s1036_s10 }
  0x14   :  { %p1043_p8 = por %p1042_p7, %p1041_p6 }
  0x16   :  { %p1044_p9 = pnand %p1043_p8, %p1037_p5 }
  0x18   :  { %1047 = shalt.err (!%p1044_p9)
}
  0x19   :  { %s1181_s11 = smov 64   ;;  %s1182_s12 = smov 4  }
  0x1a   :  { %60 = dma.hbm_to_vmem [thread:$0]  %s1316_s3, 1024, %s55_s30, [#allocation9], %s1181_s11, %s1181_s11, %s1182_s12  }
  0x1b   :  { %s1056_s1 = scalar_lea.vmem %s79_s9, 2048  ;;  %p1061_p11 = scmp.lt.s32.totalorder %s79_s9, %s79_s9 }
  0x1c   :  { %p1057_p10 = scmp.ne.s32.totalorder %s79_s9, %s1056_s1  ;;  %p1062_p12 = scmp.lt.s32.totalorder %s1056_s1, %s1056_s1 }
  0x1e   :  { %p1063_p13 = por %p1062_p12, %p1061_p11 }
  0x20   :  { %p1064_p0 = pnand %p1063_p13, %p1057_p10 }
  0x22   :  { %1067 = shalt.err (!%p1064_p0)
}
  0x23   :  { %84 = dma.hbm_to_vmem [thread:$0]  %s1318_s5, 2048, %s79_s9, [#allocation12], %s1181_s11, %s1181_s11, %s1182_s12  }
  0x24   :  { %s1183_s17 = smov [#allocation2]   ;;  %s1184_s19 = smov [#allocation7]  }
  0x25   :  { %s23_s18 = sshll.u32 %s1183_s17, 4  ;;  %s42_s3 = sshll.u32 %s1184_s19, 4  ;;  %s24_s18 = int_to_ptr.vmem [resolvable:$true] %s23_s18  ;;  %s43_s3 = int_to_ptr.vmem [resolvable:$true] %s42_s3 }
  0x26   :  { %s1076_s20 = scalar_lea.vmem %s24_s18, 128  ;;  %p1081_p2 = scmp.lt.s32.totalorder %s24_s18, %s24_s18 }
  0x27   :  { %p1077_p1 = scmp.ne.s32.totalorder %s24_s18, %s1076_s20  ;;  %p1082_p3 = scmp.lt.s32.totalorder %s1076_s20, %s1076_s20 }
  0x29   :  { %p1083_p4 = por %p1082_p3, %p1081_p2 }
  0x2b   :  { %p1084_p5 = pnand %p1083_p4, %p1077_p1 }
  0x2d   :  { %1087 = shalt.err (!%p1084_p5)
}
  0x2e   :  { %26 = dma.hbm_to_vmem [thread:$0]  %s1313_s0, 128, %s24_s18, [#allocation3]  }
  0x2f   :  { %s1096_s23 = scalar_lea.vmem %s43_s3, 128  ;;  %p1101_p7 = scmp.lt.s32.totalorder %s43_s3, %s43_s3 }
  0x30   :  { %p1097_p6 = scmp.ne.s32.totalorder %s43_s3, %s1096_s23  ;;  %p1102_p8 = scmp.lt.s32.totalorder %s1096_s23, %s1096_s23 }
  0x32   :  { %p1103_p9 = por %p1102_p8, %p1101_p7 }
  0x34   :  { %p1104_p10 = pnand %p1103_p9, %p1097_p6 }
  0x36   :  { %1107 = shalt.err (!%p1104_p10)
}
  0x37   :  { %48 = dma.hbm_to_vmem [thread:$0]  %s1315_s2, 128, %s43_s3, [#allocation6], %s1181_s11, %s1181_s11, %s1182_s12  }
  0x38   :  { %s1185_s25 = smov [#allocation10]  }
  0x39   :  { %s66_s26 = sshll.u32 %s1185_s25, 4  ;;  %s67_s26 = int_to_ptr.vmem [resolvable:$true] %s66_s26 }
  0x3a   :  { %s1116_s27 = scalar_lea.vmem %s67_s26, 2048  ;;  %p1121_p12 = scmp.lt.s32.totalorder %s67_s26, %s67_s26 }
  0x3b   :  { %p1117_p11 = scmp.ne.s32.totalorder %s67_s26, %s1116_s27  ;;  %p1122_p13 = scmp.lt.s32.totalorder %s1116_s27, %s1116_s27 }
  0x3d   :  { %p1123_p0 = por %p1122_p13, %p1121_p12 }
  0x3f   :  { %p1124_p1 = pnand %p1123_p0, %p1117_p11 }
  0x41   :  { %1127 = shalt.err (!%p1124_p1)
}
  0x42   :  { %s1186_s0 = smov 128   ;;  %s1187_s28 = smov 8  }
  0x43   :  { %72 = dma.hbm_to_vmem [thread:$0]  %s1317_s4, 2048, %s67_s26, [#allocation9], %s1186_s0, %s1186_s0, %s1187_s28  }
  0x44   :  { %s1188_s8 = smov [#allocation13]  }
  0x45   :  { %s90_s9 = sshll.u32 %s1188_s8, 4  ;;  %s91_s9 = int_to_ptr.vmem [resolvable:$true] %s90_s9 }
  0x46   :  { %s1136_s2 = scalar_lea.vmem %s91_s9, 1024  ;;  %p1141_p3 = scmp.lt.s32.totalorder %s91_s9, %s91_s9 }
  0x47   :  { %p1137_p2 = scmp.ne.s32.totalorder %s91_s9, %s1136_s2  ;;  %p1142_p4 = scmp.lt.s32.totalorder %s1136_s2, %s1136_s2 }
  0x49   :  { %p1143_p5 = por %p1142_p4, %p1141_p3 }
  0x4b   :  { %p1144_p6 = pnand %p1143_p5, %p1137_p2 }
  0x4d   :  { %1147 = shalt.err (!%p1144_p6)
}
  0x4e   :  { %96 = dma.hbm_to_vmem [thread:$0]  %s1319_s6, 1024, %s91_s9, [#allocation12], %s1181_s11, %s1181_s11, %s1182_s12  }
  0x4f   :  { %1168 = dma.done.wait [#allocation3], 128  }
  0x50   :  { %1169 = vsyncadd [#allocation3], 4294967168 }
  0x51   :  { %1170 = dma.done.wait [#allocation6], 384  }
  0x52   :  { %1171 = vsyncadd [#allocation6], 4294966912 }
  0x53   :  { %1172 = dma.done.wait [#allocation9], 3072  }
  0x54   :  { %1173 = vsyncadd [#allocation9], 4294964224 }
  0x55   :  { %1174 = dma.done.wait [#allocation12], 3072  }
  0x56   :  { %1175 = vsyncadd [#allocation12], 4294964224  ;;  %vm122_vm0 = vcmask 130048   ;;  %v119_v0 = vld [vmem:[#allocation2] sm:$0xff]  ;;  %v945_v7 = vld [vmem:[#allocation7] sm:$0xff]   ;;  %v1189_v8 = vmov 0.0   ;;  %v140_v37 = vlaneseq }
  0x57   :  { %v123_v1 = vsel %vm122_vm0, %v119_v0, 0.0  ;;  %884 = vmatprep.subr.bf16.mxu0 %v1189_v8  ;;  %vm1190_vm1 = vmmov 0   ;;  %890 = vmatprep.subr.bf16.mxu1 %v1189_v8  ;;  %v946_v9 = vld [vmem:[#allocation8 + $0x38] sm:$0xff]   ;;  %v947_v10 = vld [vmem:[#allocation8 + $0x30] sm:$0xff]   ;;  %v948_v11 = vld [vmem:[#allocation8 + $0x28] sm:$0xff]   ;;  %v1191_v51 = vmov 0  }
  0x58   :  { %124 = vadd.xlane.f32.xlu0 %v123_v1  ;;  %886 = vmatprep.mubr.msk.bf16.mxu0 %vm1190_vm1, %v1189_v8  ;;  %v949_v12 = vld [vmem:[#allocation8 + $0x20] sm:$0xff]   ;;  %v950_v13 = vld [vmem:[#allocation8 + $0x18] sm:$0xff]   ;;  %v951_v14 = vld [vmem:[#allocation8 + $0x10] sm:$0xff]   ;;  %v1282_v38 = vshrl.u32 %v140_v37, 7  ;;  %s1192_s4 = smov [#allocation14]  }
  0x59   :  { %885 = vmatpush3.bf16.msra.mxu0 %v945_v7  ;;  %906 = vmatprep.mubr.msk.bf16.mxu1 %vm1190_vm1, %v1189_v8  ;;  %v952_v21 = vld [vmem:[#allocation8 + $0x8] sm:$0xff]   ;;  %v953_v22 = vld [vmem:[#allocation8] sm:$0xff]   ;;  %v954_v23 = vld [vmem:[#allocation10 + $0x70] ss:$8 sps:$4 sm:$0xff]   ;;  %s780_s6 = sshll.u32 %s1192_s4, 4  ;;  %s781_s6 = int_to_ptr.vmem [resolvable:$true] %s780_s6 }
  0x5a   :  { %891 = vmatpush3.bf16.msra.mxu1 %v946_v9  ;;  %v956_v24 = vld [vmem:[#allocation10 + $0x74] ss:$8 sps:$4 sm:$0xff]   ;;  %v959_v25 = vld [vmem:[#allocation10 + $0x64] ss:$8 sps:$4 sm:$0xff]   ;;  %v957_v26 = vld [vmem:[#allocation10 + $0x60] ss:$8 sps:$4 sm:$0xff]   ;;  %p1153_p8 = scmp.lt.s32.totalorder %s781_s6, %s781_s6 }
  0x5b   :  { %892 = vmatprep.subr.bf16.mxu1 %v1189_v8  ;;  %409 = vmatprep.subr.bf16.mxu0 %v956_v24  ;;  %v962_v27 = vld [vmem:[#allocation10 + $0x54] ss:$8 sps:$4 sm:$0xff]   ;;  %v960_v28 = vld [vmem:[#allocation10 + $0x50] ss:$8 sps:$4 sm:$0xff]   ;;  %v965_v29 = vld [vmem:[#allocation10 + $0x44] ss:$8 sps:$4 sm:$0xff]  }
  0x5c   :  { %v963_v30 = vld [vmem:[#allocation10 + $0x40] ss:$8 sps:$4 sm:$0xff]   ;;  %v968_v31 = vld [vmem:[#allocation10 + $0x34] ss:$8 sps:$4 sm:$0xff]   ;;  %v966_v32 = vld [vmem:[#allocation10 + $0x30] ss:$8 sps:$4 sm:$0xff]  }
  0x5d   :  { %v971_v33 = vld [vmem:[#allocation10 + $0x24] ss:$8 sps:$4 sm:$0xff]   ;;  %v969_v34 = vld [vmem:[#allocation10 + $0x20] ss:$8 sps:$4 sm:$0xff]   ;;  %v974_v35 = vld [vmem:[#allocation10 + $0x14] ss:$8 sps:$4 sm:$0xff]  }
  0x5e   :  { %893 = vmatpush3.bf16.msra.mxu1 %v947_v10  ;;  %v972_v36 = vld [vmem:[#allocation10 + $0x10] ss:$8 sps:$4 sm:$0xff]   ;;  %v142_v39 = vsub.s32 0, %v1282_v38  ;;  %v1285_v40 = vld [vmem:[#allocation5] sm:$0xff]  ;;  %v984_v58 = vld [vmem:[#allocation11 + $0x60] sm:$0xff]   ;;  %s1148_s11 = scalar_lea.vmem %s781_s6, 128 }
  0x5f   :  { %894 = vmatprep.subr.bf16.mxu1 %v1189_v8  ;;  %v977_v49 = vld [vmem:[#allocation10 + $0x4] ss:$8 sps:$4 sm:$0xff]   ;;  %v975_v50 = vld [vmem:[#allocation10] ss:$8 sps:$4 sm:$0xff]   ;;  %v978_v52 = vld [vmem:[#allocation11 + $0x78] sm:$0xff]   ;;  %p1149_p7 = scmp.ne.s32.totalorder %s781_s6, %s1148_s11  ;;  %p1154_p9 = scmp.lt.s32.totalorder %s1148_s11, %s1148_s11 }
  0x60   :  { %v143_v41 = vrot.slane %v1285_v40, %v142_v39  ;;  %v979_v53 = vld [vmem:[#allocation11 + $0x38] sm:$0xff]   ;;  %v980_v54 = vld [vmem:[#allocation11 + $0x70] sm:$0xff]   ;;  %v982_v56 = vld [vmem:[#allocation11 + $0x68] sm:$0xff]  }
  0x61   :  { %v981_v55 = vld [vmem:[#allocation11 + $0x30] sm:$0xff]   ;;  %v983_v57 = vld [vmem:[#allocation11 + $0x28] sm:$0xff]   ;;  %v985_v59 = vld [vmem:[#allocation11 + $0x20] sm:$0xff]   ;;  %p1155_p10 = por %p1154_p9, %p1153_p8 }
  0x62   :  { %895 = vmatpush3.bf16.msra.mxu1 %v948_v11  ;;  %v986_v60 = vld [vmem:[#allocation11 + $0x58] sm:$0xff]   ;;  %v988_v62 = vld [vmem:[#allocation11 + $0x50] sm:$0xff]   ;;  %v990_v10 = vld [vmem:[#allocation11 + $0x48] sm:$0xff]  }
  0x63   :  { %896 = vmatprep.subr.bf16.mxu1 %v1189_v8  ;;  %v987_v61 = vld [vmem:[#allocation11 + $0x18] sm:$0xff]   ;;  %v989_v63 = vld [vmem:[#allocation11 + $0x10] sm:$0xff]   ;;  %v991_v11 = vld [vmem:[#allocation11 + $0x8] sm:$0xff]   ;;  %p1156_p11 = pnand %p1155_p10, %p1149_p7 }
  0x66   :  { %897 = vmatpush3.bf16.msra.mxu1 %v949_v12  ;;  %v992_v12 = vld [vmem:[#allocation11 + $0x40] sm:$0xff]  }
  0x67   :  { %898 = vmatprep.subr.bf16.mxu1 %v1189_v8 }
  0x6a   :  { %899 = vmatpush3.bf16.msra.mxu1 %v950_v13  ;;  %v993_v13 = vld [vmem:[#allocation11] sm:$0xff]  }
  0x6b   :  { %900 = vmatprep.subr.bf16.mxu1 %v1189_v8 }
  0x6e   :  { %901 = vmatpush3.bf16.msra.mxu1 %v951_v14  ;;  %v323_v14 = vsub.s32 2, %v1282_v38 }
  0x6f   :  { %902 = vmatprep.subr.bf16.mxu1 %v1189_v8 }
  0x72   :  { %903 = vmatpush3.bf16.msra.mxu1 %v952_v21 }
  0x73   :  { %904 = vmatprep.subr.bf16.mxu1 %v1189_v8 }
  0x76   :  { %905 = vmatpush3.bf16.msra.mxu1 %v953_v22 }
  0x77   :  { %853 = vmatprep.subr.bf16.mxu1 %v978_v52 }
  0xe1   :  { %v125_v2 = vpop.xlane.xlu0 %124 }
  0xe2   :  { %v127_v3 = vmul.f32 0.0625, %v125_v2 }
  0xe4   :  { %v128_v4 = vsub.f32 %v119_v0, %v127_v3  ;;  %v213_v0 = vsub.s32 1, %v1282_v38 }
  0xe6   :  { %v129_v5 = vmul.f32 %v128_v4, %v128_v4  ;;  %v214_v1 = vrot.slane %v1285_v40, %v213_v0 }
  0xe8   :  { %v130_v6 = vsel %vm122_vm0, %v129_v5, 0.0 }
  0xe9   :  { %131 = vadd.xlane.f32.xlu0 %v130_v6 }
 0x172   :  { %v132_v15 = vpop.xlane.xlu0 %131 }
 0x173   :  { %v133_v16 = vmul.f32 0.0625, %v132_v15  ;;  %v121_v15 = vld [vmem:[#allocation5 + $0x8] sm:$0xff] }
 0x175   :  { %v134_v17 = vadd.f32 1e-05, %v133_v16  ;;  %v324_v16 = vrot.slane %v1285_v40, %v323_v14 }
 0x177   :  { %1002 = vrsqrt.f32 %v134_v17  ;;  %v328_v17 = vrot.slane %v121_v15, %v323_v14 }
 0x184   :  { %v1003_v18 = vpop.eup %1002 }
 0x185   :  { %v136_v19 = vmul.f32 %v1003_v18, %v128_v4 }
 0x187   :  { %v139_v20 = vpack.c.bf16 %v136_v19, %v136_v19 }
 0x189   :  { %887 = vmatmul.mubr.msk.bf16.vlgmr.msra.gmra.mxu0 %vm122_vm0, %v139_v20 }
 0x18a   :  { %410 = vmatpush1.bf16.msra.mxu0 %v954_v23  ;;  %441 = vmatprep.mubr.bf16.mxu0 %v1191_v51 }
 0x18b   :  { %411 = vmatprep.subr.bf16.mxu0 %v959_v25 }
 0x18e   :  { %412 = vmatpush1.bf16.msra.mxu0 %v957_v26 }
 0x18f   :  { %413 = vmatprep.subr.bf16.mxu0 %v962_v27 }
 0x192   :  { %414 = vmatpush1.bf16.msra.mxu0 %v960_v28  ;;  %v994_v28 = vld [vmem:[#allocation13 + $0x38] sm:$0xff]  }
 0x193   :  { %415 = vmatprep.subr.bf16.mxu0 %v965_v29  ;;  %v488_v29 = vsub.s32 3, %v1282_v38 }
 0x196   :  { %416 = vmatpush1.bf16.msra.mxu0 %v963_v30 }
 0x197   :  { %417 = vmatprep.subr.bf16.mxu0 %v968_v31  ;;  %v489_v31 = vrot.slane %v1285_v40, %v488_v29 }
 0x19a   :  { %418 = vmatpush1.bf16.msra.mxu0 %v966_v32 }
 0x19b   :  { %419 = vmatprep.subr.bf16.mxu0 %v971_v33 }
 0x19e   :  { %420 = vmatpush1.bf16.msra.mxu0 %v969_v34 }
 0x19f   :  { %421 = vmatprep.subr.bf16.mxu0 %v974_v35 }
 0x1a2   :  { %422 = vmatpush1.bf16.msra.mxu0 %v972_v36 }
 0x1a3   :  { %423 = vmatprep.subr.bf16.mxu0 %v977_v49 }
 0x1a6   :  { %424 = vmatpush1.bf16.msra.mxu0 %v975_v50 }
 0x1a7   :  { %910 = vmatprep.subr.bf16.mxu0 %v1189_v8 }
 0x249   :  { %v187_v42 = vpop.f32.mrf.mxu0 }
 0x24a   :  { %v188_v43 = vadd.f32 %v187_v42, %v143_v41  ;;  %v995_v41 = vld [vmem:[#allocation13 + $0x30] sm:$0xff]   ;;  %v996_v42 = vld [vmem:[#allocation13 + $0x28] sm:$0xff]  }
 0x24b   :  { %v888_v44 = vpop.f32.mrf.mxu0 }
 0x24c   :  { %v193_v45 = vmax.f32 %v188_v43, 0.0  ;;  %v997_v43 = vld [vmem:[#allocation13 + $0x20] sm:$0xff]   ;;  %v998_v44 = vld [vmem:[#allocation13 + $0x18] sm:$0xff]  }
 0x24d   :  { %v190_v46 = vpop.f32.mrf.mxu0 }
 0x24e   :  { %v210_v47 = vpack.c.bf16 %v193_v45, %v193_v45  ;;  %v999_v45 = vld [vmem:[#allocation13 + $0x10] sm:$0xff]   ;;  %v1000_v46 = vld [vmem:[#allocation13 + $0x8] sm:$0xff]  }
 0x24f   :  { %v889_v48 = vpop.f32.mrf.mxu0 }
 0x250   :  { %907 = vmatmul.mubr.bf16.vlgmr.msra.gmra.mxu1 %v210_v47  ;;  %v1001_v47 = vld [vmem:[#allocation13] sm:$0xff]  }
 0x251   :  { %854 = vmatpush3.bf16.msra.mxu1 %v979_v53 }
 0x252   :  { %855 = vmatprep.subr.bf16.mxu1 %v980_v54 }
 0x255   :  { %856 = vmatpush3.bf16.msra.mxu1 %v981_v55 }
 0x256   :  { %857 = vmatprep.subr.bf16.mxu1 %v982_v56 }
 0x259   :  { %858 = vmatpush3.bf16.msra.mxu1 %v983_v57 }
 0x25a   :  { %859 = vmatprep.subr.bf16.mxu1 %v984_v58 }
 0x25d   :  { %860 = vmatpush3.bf16.msra.mxu1 %v985_v59  ;;  %v659_v59 = vsub.s32 6, %v1282_v38 }
 0x25e   :  { %861 = vmatprep.subr.bf16.mxu1 %v986_v60 }
 0x25f   :  { %v660_v60 = vrot.slane %v1285_v40, %v659_v59 }
 0x261   :  { %862 = vmatpush3.bf16.msra.mxu1 %v987_v61 }
 0x262   :  { %863 = vmatprep.subr.bf16.mxu1 %v988_v62 }
 0x265   :  { %864 = vmatpush3.bf16.msra.mxu1 %v989_v63 }
 0x266   :  { %865 = vmatprep.subr.bf16.mxu1 %v990_v10 }
 0x269   :  { %866 = vmatpush3.bf16.msra.mxu1 %v991_v11  ;;  %v765_v11 = vsub.s32 4, %v1282_v38 }
 0x26a   :  { %867 = vmatprep.subr.bf16.mxu1 %v992_v12  ;;  %v770_v12 = vsub.s32 5, %v1282_v38 }
 0x26b   :  { %v766_v14 = vrot.slane %v1285_v40, %v765_v11 }
 0x26d   :  { %868 = vmatpush3.bf16.msra.mxu1 %v993_v13 }
 0x310   :  { %v297_v2 = vpop.f32.mrf.mxu1 }
 0x311   :  { %v298_v3 = vadd.f32 %v297_v2, %v214_v1 }
 0x312   :  { %v908_v4 = vpop.f32.mrf.mxu1 }
 0x313   :  { %v303_v5 = vmax.f32 %v298_v3, 0.0 }
 0x314   :  { %v300_v6 = vpop.f32.mrf.mxu1 }
 0x315   :  { %v320_v7 = vpack.c.bf16 %v303_v5, %v303_v5 }
 0x316   :  { %v909_v9 = vpop.f32.mrf.mxu1 }
 0x317   :  { %442 = vmatmul.mubr.bf16.vlgmr.msra.gmra.mxu0 %v320_v7 }
 0x318   :  { %926 = vmatprep.mubr.msk.bf16.mxu0 %vm1190_vm1, %v1189_v8  ;;  %911 = vmatpush3.bf16.msra.mxu0 %v994_v28 }
 0x319   :  { %912 = vmatprep.subr.bf16.mxu0 %v1189_v8 }
 0x31c   :  { %913 = vmatpush3.bf16.msra.mxu0 %v995_v41 }
 0x31d   :  { %914 = vmatprep.subr.bf16.mxu0 %v1189_v8 }
 0x320   :  { %915 = vmatpush3.bf16.msra.mxu0 %v996_v42 }
 0x321   :  { %916 = vmatprep.subr.bf16.mxu0 %v1189_v8 }
 0x324   :  { %917 = vmatpush3.bf16.msra.mxu0 %v997_v43 }
 0x325   :  { %918 = vmatprep.subr.bf16.mxu0 %v1189_v8 }
 0x328   :  { %919 = vmatpush3.bf16.msra.mxu0 %v998_v44 }
 0x329   :  { %920 = vmatprep.subr.bf16.mxu0 %v1189_v8 }
 0x32c   :  { %921 = vmatpush3.bf16.msra.mxu0 %v999_v45 }
 0x32d   :  { %922 = vmatprep.subr.bf16.mxu0 %v1189_v8 }
 0x330   :  { %923 = vmatpush3.bf16.msra.mxu0 %v1000_v46 }
 0x331   :  { %924 = vmatprep.subr.bf16.mxu0 %v1189_v8 }
 0x334   :  { %925 = vmatpush3.bf16.msra.mxu0 %v1001_v47 }
 0x3d7   :  { %v443_v18 = vpop.f32.mrf.mxu0 }
 0x3d8   :  { %v444_v19 = vadd.f32 %v443_v18, %v324_v16 }
 0x3d9   :  { %v445_v20 = vpop.f32.mrf.mxu0 }
 0x3da   :  { %v446_v21 = vadd.f32 %v445_v20, %v328_v17  ;;  %v450_v22 = vmax.f32 %v444_v19, 0.0  ;;  %v771_v17 = vrot.slane %v1285_v40, %v770_v12 }
 0x3db   :  { %v447_v23 = vpop.f32.mrf.mxu0 }
 0x3dc   :  { %v451_v24 = vmax.f32 %v446_v21, 0.0  ;;  %v484_v27 = vpack.c.bf16 %v450_v22, %v450_v22 }
 0x3dd   :  { %v448_v25 = vpop.f32.mrf.mxu0 }
 0x3de   :  { %v485_v26 = vpack.c.bf16 %v451_v24, %v451_v24 }
 0x3e0   :  { %618 = vmatprep.mubr.bf16.mxu1 %v485_v26 }
 0x3e1   :  { %619 = vmatmul.mubr.bf16.vlgmr.msra.gmra.mxu1 %v484_v27 }
 0x4a1   :  { %v869_v30 = vpop.f32.mrf.mxu1 }
 0x4a3   :  { %v870_v32 = vpop.f32.mrf.mxu1 }
 0x4a4   :  { %v871_v33 = vadd.f32 %v870_v32, %v869_v30 }
 0x4a5   :  { %v872_v34 = vpop.f32.mrf.mxu1 }
 0x4a6   :  { %v621_v35 = vadd.f32 %v871_v33, %v489_v31 }
 0x4a7   :  { %v873_v36 = vpop.f32.mrf.mxu1 }
 0x4a8   :  { %v626_v37 = vmax.f32 %v621_v35, 0.0 }
 0x4aa   :  { %627 = vadd.xlane.f32.xlu1 %v626_v37  ;;  %v629_v39 = vmul.f32 %v626_v37, %v626_v37 }
 0x4ae   :  { %630 = vadd.xlane.f32.xlu1 %v629_v39 }
 0x533   :  { %v628_v48 = vpop.xlane.xlu1 %627 }
 0x534   :  { %v632_v49 = vmul.f32 0.03125, %v628_v48 }
 0x536   :  { %v634_v51 = vmul.f32 %v632_v49, %v632_v49  ;;  %v636_v55 = vsub.f32 %v626_v37, %v632_v49 }
 0x537   :  { %v631_v50 = vpop.xlane.xlu1 %630 }
 0x538   :  { %v633_v52 = vmul.f32 0.03125, %v631_v50 }
 0x53a   :  { %v635_v53 = vsub.f32 %v633_v52, %v634_v51 }
 0x53c   :  { %v637_v54 = vadd.f32 1e-05, %v635_v53 }
 0x53e   :  { %1004 = vrsqrt.f32 %v637_v54 }
 0x54b   :  { %v1005_v56 = vpop.eup %1004 }
 0x54c   :  { %v639_v57 = vmul.f32 %v1005_v56, %v636_v55 }
 0x54e   :  { %v656_v58 = vpack.c.bf16 %v639_v57, %v639_v57 }
 0x550   :  { %927 = vmatmul.mubr.bf16.vlgmr.msra.gmra.mxu0 %v656_v58 }
 0x610   :  { %v743_v61 = vpop.f32.mrf.mxu0 }
 0x611   :  { %v744_v8 = vadd.f32 %v743_v61, %v660_v60 }
 0x612   :  { %v928_v62 = vpop.f32.mrf.mxu0 }
 0x613   :  { %v749_v63 = vmax.f32 %v744_v8, 0.0 }
 0x614   :  { %v746_v0 = vpop.f32.mrf.mxu0 }
 0x615   :  { %750 = vadd.xlane.f32.xlu0 %v749_v63  ;;  %v752_v1 = vmul.f32 %v749_v63, %v749_v63 }
 0x616   :  { %v929_v2 = vpop.f32.mrf.mxu0 }
 0x617   :  { %753 = vadd.xlane.f32.xlu1 %v752_v1 }
 0x69e   :  { %v751_v3 = vpop.xlane.xlu0 %750 }
 0x69f   :  { %v755_v4 = vmul.f32 0.03125, %v751_v3 }
 0x6a0   :  { %v754_v5 = vpop.xlane.xlu1 %753 }
 0x6a1   :  { %v757_v6 = vmul.f32 %v755_v4, %v755_v4  ;;  %v756_v7 = vmul.f32 0.03125, %v754_v5  ;;  %v759_v13 = vsub.f32 %v749_v63, %v755_v4 }
 0x6a3   :  { %v758_v9 = vsub.f32 %v756_v7, %v757_v6 }
 0x6a5   :  { %v760_v10 = vadd.f32 1e-05, %v758_v9 }
 0x6a7   :  { %1006 = vrsqrt.f32 %v760_v10 }
 0x6b4   :  { %v1007_v15 = vpop.eup %1006 }
 0x6b5   :  { %v762_v16 = vmul.f32 %v1007_v15, %v759_v13 }
 0x6b7   :  { %v767_v18 = vmul.f32 %v766_v14, %v762_v16 }
 0x6b9   :  { %v772_v19 = vadd.f32 %v771_v17, %v767_v18 }
 0x6bb   :  { %773 = vst [vmem:[#allocation14] sm:$0xff] %v772_v19 }
 0x6bc   :  { %1159 = shalt.err (!%p1156_p11)
}
 0x6bd   :  { %783 = dma.vmem_to_hbm [thread:$0]  %s781_s6, 128, %s1320_s7, [#allocation4]  }
 0x6be   :  { %1176 = dma.done.wait [#allocation4], 128  }
 0x6bf   :  { %1177 = vsyncadd [#allocation4], 4294967168 }
 0x6c0   :  { %787 = vsyncpa [#allocation3], 1 }
 0x6c1   :  { %788 = vsyncpa [#allocation6], 1 }
 0x6c2   :  { %789 = vsyncpa [#allocation9], 1 }
 0x6c3   :  { %790 = vsyncpa [#allocation12], 1 }
 0x6c4   :  { %791 = vsyncpa [#allocation4], 1 }

</bundles_post_ra>
